<compile_context>
chip_gen: v5e
topology: v5e:2x2
jax: 0.10.0
libtpu: 0.0.40
codegen_flags: <defaults>
</compile_context>

<pallas_src>
import math
from functools import partial

import jax
import jax.numpy as jnp
from jax.experimental import pallas as pl
from jax.experimental.pallas import tpu as pltpu

_SPIKY_C = 15.0 / math.pi            # spiky normalization (times 1/h^6)
_POLY6_C = 315.0 / (64.0 * math.pi)  # poly6 ('default') normalization (times 1/h^9)

_DEFAULT_TILE = 512                  # pairwise tile edge (multiple of 128); sweepable
_PACK = 8                            # packed rows (sublane-aligned)
_PAD_COORD = 1.0e3                   # far-away coordinate for padded particles (>> radius)
_VMEM_LIMIT = 48 * 1024 * 1024       # explicit scoped-VMEM limit (< v7x 64 MiB physical)


def _density_kernel(rows_i_ref, cols_j_ref, inv_rho_ref, rho_acc_ref, *, radius):
    """Pass 1: 1/rho.  Grid (B, n_j, n_i); i (axis 2) is the reduction axis.

    d2 tile (TI, TJ) = rows_i (TI, 8) @ cols_j (8, TJ) on the MXU; the i-reduction is a
    second MXU contraction against a constant (8, TI) operand with the poly6
    normalization folded in, so the VPU only evaluates max(r^2 - d^2, 0)^3.
    """
    it = pl.program_id(2)

    @pl.when(it == 0)
    def _init():
        rho_acc_ref[...] = jnp.zeros_like(rho_acc_ref)

    d2 = jax.lax.dot_general(
        rows_i_ref[0], cols_j_ref[0],
        dimension_numbers=(((1,), (0,)), ((), ())),
        preferred_element_type=jnp.float32)                           # (TI, TJ)
    t = jnp.maximum(radius * radius - d2, 0.0)
    w = t * t * t                                                     # poly6 sans norm
    csum = jnp.full((rho_acc_ref.shape[0], d2.shape[0]),
                    _POLY6_C / radius**9, dtype=jnp.float32)          # (8, TI) constant
    rho_acc_ref[...] += jax.lax.dot_general(
        csum, w, dimension_numbers=(((1,), (0,)), ((), ())),
        preferred_element_type=jnp.float32)                           # (8, TJ), rows equal

    @pl.when(it == pl.num_programs(2) - 1)
    def _finalize():
        # rho > 0 always (self term d = 0 < radius), so the reciprocal is safe.
        inv_rho_ref[0] = pl.reciprocal(rho_acc_ref[0:1, :], approx=False)


def _xsph_kernel(rows_j_ref, cols_i_ref, velrho_j_ref, vel_i_ref, out_ref, acc_ref,
                 *, radius, viscosity):
    """Pass 2: velocity update.  Grid (B, n_i, n_j); j (axis 2) is the reduction.

    d2 tile (TJ, TI) = rows_j (TJ, 8) @ cols_i (8, TI) on the MXU.  The weighted
    velocity sum and the row-sum of A share one more MXU contraction against the
    (8, TJ) velocity operand (already scaled by spiky_norm / rho_j in the wrapper).
    """
    jt = pl.program_id(2)

    @pl.when(jt == 0)
    def _init():
        acc_ref[...] = jnp.zeros_like(acc_ref)

    d2 = jax.lax.dot_general(
        rows_j_ref[0], cols_i_ref[0],
        dimension_numbers=(((1,), (0,)), ((), ())),
        preferred_element_type=jnp.float32)                           # (TJ, TI)
    # Clamp: the |a|^2 + |b|^2 - 2 a.b identity can go slightly negative on the
    # diagonal from f32 cancellation; sqrt must not see it.
    d = jnp.sqrt(jnp.maximum(d2, 0.0))
    t = jnp.maximum(radius - d, 0.0)
    w = t * t * t                                                     # spiky sans norm
    # velrho rows: [c*vx/rho, c*vy/rho, c*vz/rho, c/rho, 0, 0, 0, 0] (c = spiky norm)
    acc_ref[...] += jax.lax.dot_general(
        velrho_j_ref[0], w, dimension_numbers=(((1,), (0,)), ((), ())),
        preferred_element_type=jnp.float32)                           # (8, TI)

    @pl.when(jt == pl.num_programs(2) - 1)
    def _finalize():
        r = acc_ref[...]                                              # (8, TI)
        v_i = vel_i_ref[0]                                            # (3, TI)
        # rows 0..2: sum_j vel_j A_ij ; row 3: sum_j A_ij
        out_ref[0] = (v_i * (1.0 - viscosity * r[3:4, :])
                      + viscosity * r[0:3, :]).astype(out_ref.dtype)


def _pick_tile(batch, n, tile):
    """Round `tile` to a multiple of 128; shrink while it would be mostly padding or
    while B * n_i_tiles is too small to keep both v7x TensorCores busy."""
    tile = max(128, (int(tile) // 128) * 128)
    n_round = ((n + 127) // 128) * 128
    tile = min(tile, n_round)
    while tile > 128 and batch * ((n + tile - 1) // tile) < 4:
        tile = max(128, ((tile // 2) // 128) * 128)
    return tile


def xsph_viscosity(locs, vel, *, radius, viscosity=0.01, tile=_DEFAULT_TILE):
    """Pallas TPU implementation of XsphViscosity.forward (num_points_per_cloud=None).

    locs, vel: (B, N, 3) arrays.  Returns updated velocities, (B, N, 3) float32.
    """
    B, N, _ = locs.shape
    radius = float(radius)
    viscosity = float(viscosity)
    locs = locs.astype(jnp.float32)
    vel = vel.astype(jnp.float32)

    tile = _pick_tile(B, N, tile)
    # Pad the particle axis to a tile multiple.  Padded particles live far away
    # (>> radius from all real particles) so they contribute exactly 0 to real
    # results, while their own density stays > 0 (no division by zero).
    n_pad = (-N) % tile
    if n_pad:
        locs = jnp.pad(locs, ((0, 0), (0, n_pad), (0, 0)), constant_values=_PAD_COORD)
        vel = jnp.pad(vel, ((0, 0), (0, n_pad), (0, 0)))
    n_p = N + n_pad
    nt = n_p // tile

    # ---- plain-JAX packing glue ----
    locs_t = jnp.transpose(locs, (0, 2, 1))                           # (B, 3, Np)
    vel_t = jnp.transpose(vel, (0, 2, 1))                             # (B, 3, Np)
    sqn = jnp.sum(locs_t * locs_t, axis=1, keepdims=True)             # (B, 1, Np)
    ones = jnp.ones((B, 1, n_p), jnp.float32)
    zeros3 = jnp.zeros((B, 3, n_p), jnp.float32)

    # d2[r, c] = <[x,y,z,|p|^2,1,0,0,0]_r , [-2x,-2y,-2z,1,|p|^2,0,0,0]_c>
    pack_rows = jnp.transpose(
        jnp.concatenate([locs_t, sqn, ones, zeros3], axis=1), (0, 2, 1))     # (B, Np, 8)
    pack_cols = jnp.concatenate([-2.0 * locs_t, ones, sqn, zeros3], axis=1)  # (B, 8, Np)

    compiler_params = pltpu.CompilerParams(
        dimension_semantics=("parallel", "parallel", "arbitrary"),
        vmem_limit_bytes=_VMEM_LIMIT)

    # ---- Pass 1: inverse density, lane-dense (B, 1, Np). ----
    inv_rho = pl.pallas_call(
        partial(_density_kernel, radius=radius),
        out_shape=jax.ShapeDtypeStruct((B, 1, n_p), jnp.float32),
        grid=(B, nt, nt),  # (batch, j-tile, i-tile); i is the reduction
        in_specs=[
            pl.BlockSpec((1, tile, _PACK), lambda b, j, i: (b, i, 0)),   # i-side rows
            pl.BlockSpec((1, _PACK, tile), lambda b, j, i: (b, 0, j)),   # j-side cols
        ],
        out_specs=pl.BlockSpec((1, 1, tile), lambda b, j, i: (b, 0, j)),
        scratch_shapes=[pltpu.VMEM((_PACK, tile), jnp.float32)],
        compiler_params=compiler_params,
    )(pack_rows, pack_cols)

    # ---- Pre-scale velocities by spiky_norm / rho_j (one small XLA elementwise). ----
    velrho = (jnp.concatenate([vel_t, ones], axis=1)
              * ((_SPIKY_C / radius**6) * inv_rho))                   # (B, 4, Np)
    velrho = jnp.concatenate(
        [velrho, jnp.zeros((B, _PACK - 4, n_p), jnp.float32)], axis=1)  # (B, 8, Np)

    # ---- Pass 2: velocity update, lane-dense (B, 3, Np). ----
    out_t = pl.pallas_call(
        partial(_xsph_kernel, radius=radius, viscosity=viscosity),
        out_shape=jax.ShapeDtypeStruct((B, 3, n_p), jnp.float32),
        grid=(B, nt, nt),  # (batch, i-tile, j-tile); j is the reduction
        in_specs=[
            pl.BlockSpec((1, tile, _PACK), lambda b, i, j: (b, j, 0)),   # j-side rows
            pl.BlockSpec((1, _PACK, tile), lambda b, i, j: (b, 0, i)),   # i-side cols
            pl.BlockSpec((1, _PACK, tile), lambda b, i, j: (b, 0, j)),   # velrho, j
            pl.BlockSpec((1, 3, tile), lambda b, i, j: (b, 0, i)),       # vel, i (finalize)
        ],
        out_specs=pl.BlockSpec((1, 3, tile), lambda b, i, j: (b, 0, i)),
        scratch_shapes=[pltpu.VMEM((_PACK, tile), jnp.float32)],
        compiler_params=compiler_params,
    )(pack_rows, pack_cols, velrho, vel_t)

    # Restore (B, N, 3) layout and drop padded particles (plain JAX).
    return jnp.transpose(out_t, (0, 2, 1))[:, :N, :]


def _xsph_reference(locs, vel, *, radius, viscosity=0.01):
    """Pure-JAX mirror of the PyTorch forward (num_points_per_cloud=None)."""
    D = locs[:, :, None, :] - locs[:, None, :, :]
    V = vel[:, :, None, :] - vel[:, None, :, :]
    L2 = jnp.sqrt(jnp.sum(D * D, axis=-1))
    inside = L2 < radius
    w_sp = jnp.where(inside, (_SPIKY_C / radius**6) * (radius - L2) ** 3, 0.0)
    w_df = jnp.where(inside,
                     (_POLY6_C / radius**9) * (radius**2 - L2 * L2) ** 3, 0.0)
    density = jnp.sum(w_df, axis=-1)                       # density[b, i]
    factor = w_sp / density[:, None, :]                    # divide by density[b, j]
    velK = V * factor[..., None]
    return vel - viscosity * jnp.sum(velK, axis=-2)


if __name__ == "__main__":
    B, N = 2, 200            # N not a tile multiple: exercises padding + 2x2 tiling
    radius = 0.4
    viscosity = 0.01

    key = jax.random.PRNGKey(0)
    k_loc, k_vel = jax.random.split(key)
    locs = jax.random.uniform(k_loc, (B, N, 3), dtype=jnp.float32)       # positions in [0,1)^3
    vel = 0.1 * jax.random.normal(k_vel, (B, N, 3), dtype=jnp.float32)   # velocities

    out = xsph_viscosity(locs, vel, radius=radius, viscosity=viscosity)
    out = jax.block_until_ready(out)

    ref = _xsph_reference(locs, vel, radius=radius, viscosity=viscosity)
    assert out.shape == (B, N, 3)
    err = float(jnp.max(jnp.abs(out - ref)))
    assert jnp.allclose(out, ref, atol=1e-4, rtol=1e-4), f"max abs err = {err}"

    print("KERNEL_OK")
</pallas_src>

<mosaic_0001>
module attributes {stable_mosaic.version = 11 : i64} {
  func.func @_density_kernel(%arg0: i32, %arg1: i32, %arg2: i32, %arg3: memref<1x128x8xf32, #tpu.memory_space<vmem>>, %arg4: memref<1x8x128xf32, #tpu.memory_space<vmem>>, %arg5: memref<1x1x128xf32, #tpu.memory_space<vmem>>, %arg6: memref<8x128xf32, #tpu.memory_space<vmem>>) attributes {dimension_semantics = [#tpu.dimension_semantics<parallel>, #tpu.dimension_semantics<parallel>, #tpu.dimension_semantics<arbitrary>], iteration_bounds = array<i64: 2, 2, 2>, scalar_prefetch = 0 : i64, scratch_operands = 1 : i64, tpu.core_type = #tpu.core_type<tc>, window_params = [{transform_indices = @transform_0, window_bounds = array<i64: 1, 128, 8>}, {transform_indices = @transform_1, window_bounds = array<i64: 1, 8, 128>}, {transform_indices = @transform_2, window_bounds = array<i64: 1, 1, 128>}]} {
    %c0_i32 = arith.constant 0 : i32
    %0 = arith.cmpi eq, %arg2, %c0_i32 : i32
    %1 = arith.extui %0 : i1 to i32
    %c0_i32_0 = arith.constant 0 : i32
    %2 = arith.cmpi ne, %1, %c0_i32_0 : i32
    scf.if %2 {
      %cst_15 = arith.constant 0.000000e+00 : f32
      %22 = vector.broadcast %cst_15 : f32 to vector<8x128xf32>
      %c0_16 = arith.constant 0 : index
      %c0_17 = arith.constant 0 : index
      %23 = vector.load %arg6[%c0_16, %c0_17] : memref<8x128xf32, #tpu.memory_space<vmem>>, vector<8x128xf32>
      tpu.vector_store %arg6[%c0_16, %c0_17], %22 {strides = array<i32>} : memref<8x128xf32, #tpu.memory_space<vmem>>, vector<8x128xf32>,
    } else {
    }
    %c0 = arith.constant 0 : index
    %c0_1 = arith.constant 0 : index
    %c0_2 = arith.constant 0 : index
    %3 = vector.load %arg3[%c0, %c0_1, %c0_2] : memref<1x128x8xf32, #tpu.memory_space<vmem>>, vector<1x128x8xf32>
    %4 = vector.shape_cast %3 : vector<1x128x8xf32> to vector<128x8xf32>
    %c0_3 = arith.constant 0 : index
    %c0_4 = arith.constant 0 : index
    %c0_5 = arith.constant 0 : index
    %5 = vector.load %arg4[%c0_3, %c0_4, %c0_5] : memref<1x8x128xf32, #tpu.memory_space<vmem>>, vector<1x8x128xf32>
    %6 = vector.shape_cast %5 : vector<1x8x128xf32> to vector<8x128xf32>
    %cst = arith.constant dense<0.000000e+00> : vector<128x128xf32>
    %7 = tpu.matmul %4, %6, %cst {dimension_numbers = #tpu.dot_dimension_numbers<[1], [0], [0], [1], [0, 0, 1, 1], [], []>} : vector<128x8xf32>, vector<8x128xf32>, vector<128x128xf32> -> vector<128x128xf32>
    %cst_6 = arith.constant 1.600000e-01 : f32
    %8 = vector.broadcast %cst_6 : f32 to vector<128x128xf32>
    %9 = arith.subf %8, %7 : vector<128x128xf32>
    %cst_7 = arith.constant 0.000000e+00 : f32
    %10 = vector.broadcast %cst_7 : f32 to vector<128x128xf32>
    %11 = arith.maximumf %9, %10 : vector<128x128xf32>
    %12 = arith.mulf %11, %11 : vector<128x128xf32>
    %13 = arith.mulf %12, %11 : vector<128x128xf32>
    %cst_8 = arith.constant 5976.41552 : f32
    %14 = vector.broadcast %cst_8 : f32 to vector<8x128xf32>
    %c0_9 = arith.constant 0 : index
    %c0_10 = arith.constant 0 : index
    %15 = vector.load %arg6[%c0_9, %c0_10] : memref<8x128xf32, #tpu.memory_space<vmem>>, vector<8x128xf32>
    %cst_11 = arith.constant dense<0.000000e+00> : vector<8x128xf32>
    %16 = tpu.matmul %14, %13, %cst_11 {dimension_numbers = #tpu.dot_dimension_numbers<[1], [0], [0], [1], [0, 0, 1, 1], [], []>} : vector<8x128xf32>, vector<128x128xf32>, vector<8x128xf32> -> vector<8x128xf32>
    %17 = arith.addf %15, %16 : vector<8x128xf32>
    %c0_12 = arith.constant 0 : index
    %c0_13 = arith.constant 0 : index
    %18 = vector.load %arg6[%c0_12, %c0_13] : memref<8x128xf32, #tpu.memory_space<vmem>>, vector<8x128xf32>
    tpu.vector_store %arg6[%c0_12, %c0_13], %17 {strides = array<i32>} : memref<8x128xf32, #tpu.memory_space<vmem>>, vector<8x128xf32>,
    %c1_i32 = arith.constant 1 : i32
    %19 = arith.cmpi eq, %arg2, %c1_i32 : i32
    %20 = arith.extui %19 : i1 to i32
    %c0_i32_14 = arith.constant 0 : i32
    %21 = arith.cmpi ne, %20, %c0_i32_14 : i32
    scf.if %21 {
      %c0_15 = arith.constant 0 : index
      %c0_16 = arith.constant 0 : index
      %22 = vector.load %arg6[%c0_15, %c0_16] : memref<8x128xf32, #tpu.memory_space<vmem>>, vector<1x128xf32>
      %23 = tpu.reciprocal %22 : vector<1x128xf32> -> vector<1x128xf32>
      %c0_17 = arith.constant 0 : index
      %c0_18 = arith.constant 0 : index
      %c0_19 = arith.constant 0 : index
      %24 = vector.load %arg5[%c0_17, %c0_18, %c0_19] : memref<1x1x128xf32, #tpu.memory_space<vmem>>, vector<1x1x128xf32>
      %25 = vector.shape_cast %24 : vector<1x1x128xf32> to vector<1x128xf32>
      %26 = vector.shape_cast %23 : vector<1x128xf32> to vector<1x1x128xf32>
      tpu.vector_store %arg5[%c0_17, %c0_18, %c0_19], %26 {strides = array<i32>} : memref<1x1x128xf32, #tpu.memory_space<vmem>>, vector<1x1x128xf32>,
    } else {
    }
    return
  }
  func.func @transform_0(%arg0: i32, %arg1: i32, %arg2: i32) -> (i32, i32, i32) {
    %c0_i32 = arith.constant 0 : i32
    %c0_i32_0 = arith.constant 0 : i32
    return %arg0, %arg2, %c0_i32 : i32, i32, i32
  }
  func.func @transform_1(%arg0: i32, %arg1: i32, %arg2: i32) -> (i32, i32, i32) {
    %c0_i32 = arith.constant 0 : i32
    %c0_i32_0 = arith.constant 0 : i32
    return %arg0, %c0_i32, %arg1 : i32, i32, i32
  }
  func.func @transform_2(%arg0: i32, %arg1: i32, %arg2: i32) -> (i32, i32, i32) {
    %c0_i32 = arith.constant 0 : i32
    %c0_i32_0 = arith.constant 0 : i32
    return %arg0, %c0_i32, %arg1 : i32, i32, i32
  }
}

</mosaic_0001>

<bundles_post_ra>
// kernel: tpu_custom_call.1
= control target key start
LH: loop header
LB: loop body
LE: loop exit
PB: predicated region body
PF: predicated region fallthrough
CT: control target
= control target key end

     0   :  { %7 = vsyncpa [#allocation4], 0  ;;  %s1017_s0 = inlined_call_operand.vmem [shape: f32[2,256,8], index: 0, kind: input, shape index: {}]   ;;  %s1018_s1 = inlined_call_operand.vmem [shape: f32[2,8,256], index: 1, kind: input, shape index: {}]   ;;  %s1019_s2 = inlined_call_operand.hbm [shape: f32[2,1,256], index: 2, kind: output, shape index: {}]  }
   0x1   :  { %9 = vsyncpa [#allocation4 + $0x1], 0  ;;  %s818_s9 = smov 0   ;;  %s820_s10 = smov 0  }
   0x2   :  { %s822_s11 = smov 0   ;;  %s824_s12 = smov 0  }
   0x3   :  { %s826_s13 = smov 0   ;;  %s828_s14 = smov 0  }
   0x4   :  { %s830_s15 = smov 0   ;;  %s832_s16 = smov 0  }
   0x5   :  { %s834_s17 = smov 0   ;;  %s836_s18 = smov 0  }
   0x6 LB: > { %1024 = sst [smem:[#allocation6_spill]] %s791_s16  ;;  %s565_s19 = sadd.s32 4294967295, %s799_s18   ;;  %s799_s18 = sphi %s836_s18, %s15_s18   ;;  %s795_s17 = sphi %s834_s17, %s1037_s17   ;;  %s791_s16 = sphi %s832_s16, %s1036_s16   ;;  %s787_s15 = sphi %s830_s15, %s1042_s15   ;;  %s783_s14 = sphi %s828_s14, %s1034_s14   ;;  %s779_s13 = sphi %s826_s13, %s1033_s13   ;;  %s775_s12 = sphi %s824_s12, %s1041_s12   ;;  %s771_s11 = sphi %s822_s11, %s1040_s11   ;;  %s767_s10 = sphi %s820_s10, %s1039_s10   ;;  %s763_s9 = sphi %s818_s9, %s1038_s9  }
   0x7   : > { %1025 = sst [smem:[#allocation7_spill]] %s795_s17  ;;  %s566_s20 = sadd.s32 4294967294, %s799_s18  }
   0x8   : > { %s27_s21 = sadd.s32 1, %s787_s15  ;;  %s30_s22 = sadd.s32 1, %s791_s16 }
   0x9   : > { %p28_p0 = scmp.ge.s32.totalorder %s27_s21, 2  ;;  %s34_s23 = sadd.s32 1, %s795_s17 }
   0xa   : > { %p109_p1 = scmp.ne.s32.totalorder %s771_s11, %s767_s10  ;;  %p110_p2 = scmp.eq.s32.totalorder %s565_s19, 7 }
   0xb   : > { %s1044_s21 = smov (%p28_p0, %s27_s21), 0  ;;  %s1046_s22 = smov (!%p28_p0, %s30_s22), %s791_s16 }
   0xc   : > { %1026 = sst [smem:[#allocation8_spill]] %s1044_s21  ;;  %p115_p3 = scmp.ne.s32.totalorder %s767_s10, %s763_s9 }
   0xd   : > { %p32_p4 = scmp.ge.s32.totalorder %s1046_s22, 2  ;;  %p116_p5 = scmp.eq.s32.totalorder %s566_s20, 7 }
   0xe   : > { %p880_p6 = por %p110_p2, %p109_p1  ;;  %p569_p8 = scmp.ge.s32.totalorder %s799_s18, 1 }
   0xf   : > { %s1048_s22 = smov (%p32_p4, %s1046_s22), 0  ;;  %s1050_s23 = smov (!%p32_p4, %s34_s23), %s795_s17 }
  0x10   : > { %1028 = sst [smem:[#allocation9_spill]] %s1048_s22  ;;  %p887_p7 = por %p116_p5, %p115_p3 }
  0x11   : > { %p36_p9 = scmp.ge.s32.totalorder %s1050_s23, 2  ;;  %p158_p10 = scmp.lt.s32.totalorder %s799_s18, 9 }
  0x12   : > { %s95_s26 = ssub.s32 %s791_s16, %s1048_s22  ;;  %s99_s29 = sadd.s32 1, %s771_s11 }
  0x13   : > { %s1052_s23 = smov (%p36_p9, %s1050_s23), 0  ;;  %p159_p11 = pnand %p569_p8, %p158_p10 }
  0x14   : > { %1030 = sst [smem:[#allocation10_spill]] %s1052_s23  ;;  %s94_s27 = ssub.s32 %s795_s17, %s1052_s23 }
  0x15   : > { %s96_s28 = sor.u32 %s95_s26, %s94_s27  ;;  %162 = sbr.rel (%p159_p11) target bundleno = 415 (0x19f), region = 28 }
  0x16   : > { %p97_p12 = scmp.eq.s32.totalorder %s96_s28, 0  ;;  %s570_s4 = sshll.u32 (!%p159_p11), %s775_s12, 4 }
  0x17   : > { %p192_p13 = scmp.lt.s32.totalorder (!%p159_p11), %s783_s14, 1  ;;  %p194_p0 = scmp.lt.s32.totalorder (!%p159_p11), %s570_s4, 31 }
  0x18   : > { %s901_s30 = scalar_select %p97_p12, %s771_s11, %s99_s29  }
  0x19   : > { %p203_p1 = scmp.lt.s32.totalorder (!%p159_p11), %s779_s13, 1  ;;  %s1031_s17 = sand.u32 (!%p159_p11), 1, %s767_s10  }
  0x1a   : > { %s193_s5 = scalar_select %p192_p13, %s783_s14, 1 }
  0x1b   : > { %s1054_s4 = smov (!%p194_p0, %s570_s4), 31  ;;  %s919_s16 = scalar_lea.vmem [#allocation3], %s1031_s17 }
  0x1c   : > { %s571_s6 = sshll.u32 %s193_s5, 5  ;;  %s573_s27 = sshll.u32 %s193_s5, 1 }
  0x1d   : > { %s197_s7 = sadd.s32 %s571_s6, %s1054_s4  ;;  %p575_p2 = scmp.ne.s32.totalorder %s775_s12, 0 }
  0x1e   : > { %s572_s8 = sshll.u32 %s197_s7, 3 }
  0x1f   : > { %s911_s26 = scalar_lea.vmem %s1017_s0, %s572_s8 }
  0x20   : > { %s204_s28 = scalar_select %p203_p1, %s779_s13, 1 }
  0x21   : > { %212 = sbr.rel (%p575_p2) target bundleno = 40 (0x28), region = 32 }
  0x22   : > { %s206_s29 = sadd.s32 %s573_s27, %s204_s28 }
  0x23   : > { %s574_s23 = sshll.u32 %s206_s29, 3 }
  0x24   : > { %s208_s21 = scalar_lea.vmem %s1018_s1, %s574_s23 }
  0x26   : > { %v801_v0 = vmov 0.0  }
  0x27   : > { %213 = vst [vmem:[#allocation2] sm:$0xff] %v801_v0 }
  0x28 PF: > { %v230_v1 = vld [vmem:[%s208_s21] sm:$0xff]  ;;  %v220_v2 = vld [vmem:[%s911_s26 + $0x30] sm:$0xff]  ;;  %vm231_vm0 = vcmask 64512   ;;  %v221_v5 = vld [vmem:[%s911_s26 + $0x38] sm:$0xff]  ;;  %p592_p3 = scmp.ne.s32.totalorder %s775_s12, 1 }
  0x29   : > { %v226_v3 = vld [vmem:[%s911_s26 + $0x60] sm:$0xff]  ;;  %596 = vmatpush.msra.mxu2 %v230_v1  ;;  %597 = vmatpush.msra.mxu3 %v230_v1  ;;  %v227_v6 = vld [vmem:[%s911_s26 + $0x68] sm:$0xff]  ;;  %v228_v9 = vld [vmem:[%s911_s26 + $0x70] sm:$0xff] }
  0x2a   : > { %v214_v4 = vld [vmem:[%s911_s26] sm:$0xff]  ;;  %582 = vmatmul.msk.f32.vlgmr.msra.gmra.mxu2 %vm231_vm0, %v220_v2  ;;  %588 = vmatmul.msk.f32.vlgmr.msra.gmra.mxu3 %vm231_vm0, %v226_v3  ;;  %v215_v7 = vld [vmem:[%s911_s26 + $0x8] sm:$0xff]  ;;  %v216_v10 = vld [vmem:[%s911_s26 + $0x10] sm:$0xff] }
  0x2b   : > { %295 = vmatpush.msra.mxu0 %v230_v1  ;;  %v222_v8 = vld [vmem:[%s911_s26 + $0x40] sm:$0xff]  ;;  %v223_v11 = vld [vmem:[%s911_s26 + $0x48] sm:$0xff]  ;;  %v229_v12 = vld [vmem:[%s911_s26 + $0x78] sm:$0xff] }
  0x2c   : > { %576 = vmatmul.msk.f32.vlgmr.msra.gmra.mxu0 %vm231_vm0, %v214_v4  ;;  %v217_v13 = vld [vmem:[%s911_s26 + $0x18] sm:$0xff]  ;;  %v224_v14 = vld [vmem:[%s911_s26 + $0x50] sm:$0xff]  ;;  %v218_v15 = vld [vmem:[%s911_s26 + $0x20] sm:$0xff] }
  0x2d   : > { %v225_v16 = vld [vmem:[%s911_s26 + $0x58] sm:$0xff]  ;;  %v219_v17 = vld [vmem:[%s911_s26 + $0x28] sm:$0xff] }
  0x32   : > { %583 = vmatmul.msk.f32.gmra.mxu2 %vm231_vm0, %v221_v5  ;;  %589 = vmatmul.msk.f32.gmra.mxu3 %vm231_vm0, %v227_v6 }
  0x34   : > { %577 = vmatmul.msk.f32.gmra.mxu0 %vm231_vm0, %v215_v7 }
  0x3a   : > { %584 = vmatmul.msk.f32.gmra.mxu2 %vm231_vm0, %v222_v8  ;;  %590 = vmatmul.msk.f32.gmra.mxu3 %vm231_vm0, %v228_v9 }
  0x3c   : > { %578 = vmatmul.msk.f32.gmra.mxu0 %vm231_vm0, %v216_v10 }
  0x42   : > { %585 = vmatmul.msk.f32.gmra.mxu2 %vm231_vm0, %v223_v11  ;;  %591 = vmatmul.msk.f32.gmra.mxu3 %vm231_vm0, %v229_v12 }
  0x44   : > { %579 = vmatmul.msk.f32.gmra.mxu0 %vm231_vm0, %v217_v13 }
  0x4a   : > { %586 = vmatmul.msk.f32.gmra.mxu2 %vm231_vm0, %v224_v14 }
  0x4c   : > { %580 = vmatmul.msk.f32.gmra.mxu0 %vm231_vm0, %v218_v15 }
  0x52   : > { %587 = vmatmul.msk.f32.gmra.mxu2 %vm231_vm0, %v225_v16 }
  0x54   : > { %581 = vmatmul.msk.f32.gmra.mxu0 %vm231_vm0, %v219_v17 }
  0xa9   : > { %v954_v18 = vpop.f32.mrf.mxu0 }
  0xad   : > { %v315_v19 = vpop.f32.mrf.mxu2  ;;  %v333_v20 = vpop.f32.mrf.mxu3 }
  0xae   : > { %v357_v32 = vsub.f32 0.16, %v333_v20  ;;  %v351_v58 = vsub.f32 0.16, %v315_v19  ;;  %v345_v19 = vsub.f32 0.16, %v954_v18 }
  0xb0   : > { %v373_v37 = vmax.f32 %v357_v32, 0.0  ;;  %v367_v2 = vmax.f32 %v351_v58, 0.0 }
  0xb1   : > { %v956_v21 = vpop.f32.mrf.mxu0 }
  0xb2   : > { %v389_v43 = vmul.f32 %v373_v37, %v373_v37  ;;  %v383_v10 = vmul.f32 %v367_v2, %v367_v2  ;;  %v346_v14 = vsub.f32 0.16, %v956_v21 }
  0xb4   : > { %v405_v48 = vmul.f32 %v389_v43, %v373_v37 }
  0xb5   : > { %v318_v22 = vpop.f32.mrf.mxu2  ;;  %v336_v23 = vpop.f32.mrf.mxu3 }
  0xb6   : > { %v358_v28 = vsub.f32 0.16, %v336_v23  ;;  %v352_v54 = vsub.f32 0.16, %v318_v22  ;;  %v399_v23 = vmul.f32 %v383_v10, %v367_v2 }
  0xb8   : > { %v374_v35 = vmax.f32 %v358_v28, 0.0  ;;  %v368_v62 = vmax.f32 %v352_v54, 0.0 }
  0xb9   : > { %v958_v24 = vpop.f32.mrf.mxu0 }
  0xba   : > { %v390_v40 = vmul.f32 %v374_v35, %v374_v35  ;;  %v384_v6 = vmul.f32 %v368_v62, %v368_v62  ;;  %v347_v11 = vsub.f32 0.16, %v958_v24  ;;  %v361_v24 = vmax.f32 %v345_v19, 0.0 }
  0xbc   : > { %v406_v46 = vmul.f32 %v390_v40, %v374_v35  ;;  %v400_v17 = vmul.f32 %v384_v6, %v368_v62  ;;  %v363_v20 = vmax.f32 %v347_v11, 0.0  ;;  %v409_v35 = vld [vmem:[#allocation2] sm:$0xff] }
  0xbd   : > { %v321_v25 = vpop.f32.mrf.mxu2  ;;  %v339_v26 = vpop.f32.mrf.mxu3 }
  0xbe   : > { %v359_v27 = vsub.f32 0.16, %v339_v26  ;;  %v353_v51 = vsub.f32 0.16, %v321_v25  ;;  %v362_v25 = vmax.f32 %v346_v14, 0.0  ;;  %v379_v28 = vmul.f32 %v363_v20, %v363_v20 }
  0xc0   : > { %v375_v33 = vmax.f32 %v359_v27, 0.0  ;;  %v369_v59 = vmax.f32 %v353_v51, 0.0  ;;  %v395_v32 = vmul.f32 %v379_v28, %v363_v20 }
  0xc1   : > { %v306_v29 = vpop.f32.mrf.mxu0 }
  0xc2   : > { %v391_v38 = vmul.f32 %v375_v33, %v375_v33  ;;  %v385_v3 = vmul.f32 %v369_v59, %v369_v59  ;;  %v348_v7 = vsub.f32 0.16, %v306_v29 }
  0xc4   : > { %v407_v44 = vmul.f32 %v391_v38, %v375_v33  ;;  %v401_v13 = vmul.f32 %v385_v3, %v369_v59  ;;  %v364_v15 = vmax.f32 %v348_v7, 0.0 }
  0xc5   : > { %v324_v30 = vpop.f32.mrf.mxu2  ;;  %v342_v31 = vpop.f32.mrf.mxu3 }
  0xc6   : > { %v360_v34 = vsub.f32 0.16, %v342_v31  ;;  %v354_v49 = vsub.f32 0.16, %v324_v30  ;;  %v380_v26 = vmul.f32 %v364_v15, %v364_v15  ;;  %v378_v30 = vmul.f32 %v362_v25, %v362_v25 }
  0xc7   : > { %v377_v31 = vmul.f32 %v361_v24, %v361_v24 }
  0xc8   : > { %v376_v36 = vmax.f32 %v360_v34, 0.0  ;;  %v370_v55 = vmax.f32 %v354_v49, 0.0  ;;  %v396_v21 = vmul.f32 %v380_v26, %v364_v15  ;;  %v394_v18 = vmul.f32 %v378_v30, %v362_v25 }
  0xc9   : > { %v309_v45 = vpop.f32.mrf.mxu0  ;;  %v393_v33 = vmul.f32 %v377_v31, %v361_v24  ;;  %v802_v34 = vmov 5976.4155  }
  0xca   : > { %v392_v39 = vmul.f32 %v376_v36, %v376_v36  ;;  %v386_v63 = vmul.f32 %v370_v55, %v370_v55  ;;  %v349_v4 = vsub.f32 0.16, %v309_v45 }
  0xcc   : > { %v408_v41 = vmul.f32 %v392_v39, %v376_v36  ;;  %v402_v9 = vmul.f32 %v386_v63, %v370_v55  ;;  %v365_v12 = vmax.f32 %v349_v4, 0.0 }
  0xcd   : > { %v327_v42 = vpop.f32.mrf.mxu2 }
  0xce   : > { %410 = vmatpush.msra.mxu1 %v408_v41  ;;  %v355_v47 = vsub.f32 0.16, %v327_v42  ;;  %v381_v22 = vmul.f32 %v365_v12, %v365_v12 }
  0xd0   : > { %411 = vmatpush.msra.mxu1 %v407_v44  ;;  %v371_v52 = vmax.f32 %v355_v47, 0.0  ;;  %v397_v29 = vmul.f32 %v381_v22, %v365_v12 }
  0xd1   : > { %v312_v57 = vpop.f32.mrf.mxu0 }
  0xd2   : > { %412 = vmatpush.msra.mxu1 %v406_v46  ;;  %v387_v60 = vmul.f32 %v371_v52, %v371_v52  ;;  %v350_v1 = vsub.f32 0.16, %v312_v57 }
  0xd4   : > { %413 = vmatpush.msra.mxu1 %v405_v48  ;;  %v403_v5 = vmul.f32 %v387_v60, %v371_v52  ;;  %v366_v8 = vmax.f32 %v350_v1, 0.0 }
  0xd5   : > { %v330_v50 = vpop.f32.mrf.mxu2 }
  0xd6   : > { %v356_v53 = vsub.f32 0.16, %v330_v50  ;;  %v382_v16 = vmul.f32 %v366_v8, %v366_v8 }
  0xd8   : > { %v372_v56 = vmax.f32 %v356_v53, 0.0  ;;  %v398_v27 = vmul.f32 %v382_v16, %v366_v8 }
  0xda   : > { %v388_v61 = vmul.f32 %v372_v56, %v372_v56 }
  0xdc   : > { %v404_v0 = vmul.f32 %v388_v61, %v372_v56 }
  0xde   : > { %414 = vmatpush.msra.mxu1 %v404_v0 }
  0xe0   : > { %415 = vmatpush.msra.mxu1 %v403_v5 }
  0xe2   : > { %416 = vmatpush.msra.mxu1 %v402_v9 }
  0xe4   : > { %417 = vmatpush.msra.mxu1 %v401_v13 }
  0xe6   : > { %418 = vmatpush.msra.mxu1 %v400_v17 }
  0xe8   : > { %419 = vmatpush.msra.mxu1 %v399_v23 }
  0xea   : > { %420 = vmatpush.msra.mxu1 %v398_v27 }
  0xec   : > { %421 = vmatpush.msra.mxu1 %v397_v29 }
  0xee   : > { %422 = vmatpush.msra.mxu1 %v396_v21 }
  0xf0   : > { %423 = vmatpush.msra.mxu1 %v395_v32 }
  0xf2   : > { %424 = vmatpush.msra.mxu1 %v394_v18 }
  0xf4   : > { %425 = vmatpush.msra.mxu1 %v393_v33 }
  0xf5   : > { %426 = vmatmul.f32.vlgmr.msra.gmra.mxu1 %v802_v34 }
 0x171   : > { %435 = sbr.rel (%p592_p3) target bundleno = 399 (0x18f), region = 36 }
 0x172   : > { %v427_v36 = vpop.f32.mrf.mxu1 }
 0x173   : > { %v430_v37 = vadd.f32 %v427_v36, %v409_v35 }
 0x175   : > { %431 = vst [vmem:[#allocation2] sm:$0xff] %v430_v37 }
 0x17c   : > { %v436_v38 = vld [vmem:[#allocation2] sm:$0x1] }
 0x17d   : > { %687 = vrcp.f32 %v436_v38  ;;  %v448_v41 = vand.u32 2147483648, %v436_v38  ;;  %vm442_vm1 = vweird.f32 %v436_v38  ;;  %v446_v43 = vand.u32 2147483647, %v436_v38 }
 0x17f   : > { %v449_v45 = vor.u32 1.1754944e-38, %v448_v41  ;;  %vm447_vm4 = vcmp.eq.f32.partialorder %v446_v43, 8.507059e+37 }
 0x183   : > { %v688_v39 = vpop.eup %687 }
 0x184   : > { %v438_v40 = vmul.f32 %v688_v39, %v436_v38  ;;  %vm443_vm2 = vweird.f32 %v688_v39 }
 0x185   : > { %vm444_vm3 = vmor %vm442_vm1, %vm443_vm2 }
 0x186   : > { %v439_v42 = vsub.f32 1.0, %v438_v40 }
 0x188   : > { %v440_v44 = vmul.f32 %v688_v39, %v439_v42 }
 0x18a   : > { %v441_v46 = vadd.f32 %v688_v39, %v440_v44 }
 0x18c   : > { %v445_v47 = vsel %vm444_vm3, %v688_v39, %v441_v46 }
 0x18d   : > { %v450_v48 = vsel %vm447_vm4, %v449_v45, %v445_v47 }
 0x18e   : > { %451 = vst [vmem:[%s919_s16] sm:$0x1] %v450_v48 }
 0x18f PF: > { %s593_s12 = sshll.u32 %s783_s14, 1  ;;  %s465_s21 = sshll.u32 %s919_s16, 4  ;;  %s466_s21 = int_to_ptr.vmem [resolvable:$true] %s465_s21 }
 0x190   : > { %s462_s17 = sadd.s32 %s779_s13, %s593_s12  ;;  %s1032_s5 = sand.u32 1, %s767_s10  }
 0x191   : > { %s463_s3 = scalar_lea.hbm %s1019_s2, %s462_s17  ;;  %s453_s6 = scalar_lea.sflag [#allocation4], %s1032_s5 }
 0x192   : > { %s467_s4 = sshll.u32 %s463_s3, 4  ;;  %s709_s13 = scalar_lea.hbm %s1019_s2, 4  ;;  %s468_s4 = int_to_ptr.hbm [resolvable:$true] %s467_s4 }
 0x193   : > { %s703_s7 = sshra.s32 %s468_s4, 4  ;;  %s704_s7 = int_to_ptr.hbm [resolvable:$true] %s703_s7 }
 0x194   : > { %s705_s8 = scalar_lea.hbm %s704_s7, 1  ;;  %p710_p9 = scmp.lt.s32.totalorder %s704_s7, %s1019_s2 }
 0x195   : > { %p706_p4 = scmp.ne.s32.totalorder %s704_s7, %s705_s8  ;;  %p711_p10 = scmp.lt.s32.totalorder %s709_s13, %s705_s8 }
 0x197   : > { %p707_p5 = pnand %p706_p4, %p880_p6  ;;  %p712_p11 = por %p711_p10, %p710_p9 }
 0x199   : > { %p708_p8 = pneg %p707_p5 }
 0x19b   : > { %p713_p12 = pnand %p712_p11, %p708_p8 }
 0x19d   : > { %716 = shalt.err (!%p713_p12)
}
 0x19e   : > { %598 = dma.vmem_to_hbm [thread:$0]  (%p880_p6), %s466_s21, 16, %s468_s4, %s453_s6  }
 0x19f PF: > { %p604_p13 = scmp.ge.s32.totalorder %s799_s18, 2  ;;  %s479_s26 = sand.u32 1, %s763_s9  }
 0x1a0   : > { %s480_s27 = scalar_lea.sflag [#allocation4], %s479_s26 }
 0x1a1   : > { %p601_p0 = pnand %p604_p13, %p887_p7 }
 0x1a3   : > { %p602_p1 = pneg %p601_p0 }
 0x1a5   : > { %758 = dma.done.wait (%p602_p1), %s480_s27, 16  }
 0x1a6   : > { %760 = vsyncadd (%p602_p1), %s480_s27, 4294967280  ;;  %s15_s18 = sadd.s32 1, %s799_s18   ;;  %s1033_s13 = sld [smem:[#allocation6_spill]] }
 0x1a7   : > { %p12_p2 = scmp.ge.s32.totalorder %s15_s18, 10   ;;  %s1034_s14 = sld [smem:[#allocation7_spill]] }
 0x1a8   : > { %s1035_s24 = sld [smem:[#allocation8_spill]]  ;;  %s1038_s9 = smov %s767_s10 }
 0x1a9   : > { %s1036_s16 = sld [smem:[#allocation9_spill]]  ;;  %s1039_s10 = smov %s771_s11 }
 0x1aa   : > { %s1037_s17 = sld [smem:[#allocation10_spill]]  ;;  %s1040_s11 = smov %s901_s30 }
 0x1ab   : > { %s1041_s12 = smov %s787_s15  ;;  %14 = sbr.rel (!%p12_p2) target bundleno = 6 (0x6), region = 74 }
 0x1ae   : > { %s1042_s15 = smov %s1035_s24 }
 0x1b0   :  { %485 = vsyncpa [#allocation4], 1 }
 0x1b1   :  { %487 = vsyncpa [#allocation4 + $0x1], 1 }

</bundles_post_ra>
